<compile_context>
chip_gen: v6e
topology: v6e:2x2x1
jax: 0.10.0
libtpu: 0.0.40
codegen_flags: <defaults>
</compile_context>

<pallas_src>
from typing import NamedTuple

import jax
import jax.numpy as jnp
from jax.experimental import pallas as pl
from jax.experimental.pallas import tpu as pltpu


def _round_up(a: int, b: int) -> int:
    return -(-a // b) * b


# ---------------------------------------------------------------------------
# Kernels
# ---------------------------------------------------------------------------
def _ffn_kernel_resident(x_ref, w1_ref, b1_ref, w2_ref, b2_ref, o_ref):
    """Fully fused FFN; all weights resident in VMEM; grid = (row blocks,)."""
    # bf16 operands on the MXU, f32 accumulation (native MXU rate everywhere).
    h = jnp.dot(x_ref[...].astype(jnp.bfloat16), w1_ref[...],
                preferred_element_type=jnp.float32)
    h = h + b1_ref[...]                      # (tm, Np) + (1, Np) broadcast
    h = h * jax.nn.sigmoid(h)                # SiLU; sigmoid -> EUP slot
    y = jnp.dot(h.astype(jnp.bfloat16), w2_ref[...],
                preferred_element_type=jnp.float32)
    o_ref[...] = (y + b2_ref[...]).astype(o_ref.dtype)


def _ffn_kernel_stream_w2(x_ref, w1_ref, b1_ref, w2_ref, b2_ref, o_ref, h_ref):
    """N-tiled fallback: w2 / b2 column blocks streamed over grid axis 1.

    The hidden activation h is computed once per row tile (j == 0) into a bf16
    VMEM scratch and reused for every w2 column block.
    """
    @pl.when(pl.program_id(1) == 0)
    def _():
        h = jnp.dot(x_ref[...].astype(jnp.bfloat16), w1_ref[...],
                    preferred_element_type=jnp.float32)
        h = h + b1_ref[...]
        h = h * jax.nn.sigmoid(h)
        h_ref[...] = h.astype(h_ref.dtype)

    y = jnp.dot(h_ref[...], w2_ref[...], preferred_element_type=jnp.float32)
    o_ref[...] = (y + b2_ref[...]).astype(o_ref.dtype)


# ---------------------------------------------------------------------------
# Parameter preparation (run ONCE per weight set, outside the hot path)
# ---------------------------------------------------------------------------
class FFNParams(NamedTuple):
    w1: jax.Array   # (Kp, Np) bf16, zero padded
    b1: jax.Array   # (1,  Np) f32, zero padded
    w2: jax.Array   # (Np, Np) bf16, zero padded
    b2: jax.Array   # (1,  Np) f32, zero padded
    k: int          # true in_features
    n: int          # true out_features


def prepare_ffn_params(w1, b1, w2, b2) -> FFNParams:
    """Pad feature dims to 128-lane multiples and cast weights to bf16.

    Zero padding is exact: padded K columns contribute 0 to the contraction,
    padded hidden lanes give SiLU(0) = 0 against zero w2 rows, and padded
    output lanes are sliced off by the caller.
    """
    K, N = w1.shape
    assert w2.shape == (N, N) and b1.shape == (N,) and b2.shape == (N,)
    Kp, Np = _round_up(K, 128), _round_up(N, 128)
    # TODO(synk): pad/tile to 256 on v6e/v7x when MXU-bound (256x256 arrays).
    w1p = jnp.zeros((Kp, Np), jnp.bfloat16).at[:K, :N].set(w1.astype(jnp.bfloat16))
    w2p = jnp.zeros((Np, Np), jnp.bfloat16).at[:N, :N].set(w2.astype(jnp.bfloat16))
    b1p = jnp.zeros((1, Np), jnp.float32).at[0, :N].set(b1.astype(jnp.float32))
    b2p = jnp.zeros((1, Np), jnp.float32).at[0, :N].set(b2.astype(jnp.float32))
    return FFNParams(w1p, b1p, w2p, b2p, K, N)


def _vmem_capacity_bytes() -> int:
    try:
        info = pltpu.get_tpu_info()
        return int(getattr(info, "vmem_capacity_bytes", 64 << 20))
    except Exception:
        return 64 << 20   # conservative default: v7x per-TensorCore VMEM


# ---------------------------------------------------------------------------
# Wrapper
# ---------------------------------------------------------------------------
def position_wise_ffn(x, params: FFNParams, *, tm: int = 512, tn: int = 512,
                      force_stream_w2: bool = False):
    """x: (..., K) -> (..., N) where N is out_features of both linear layers."""
    orig_shape = x.shape
    K, N = params.k, params.n
    assert orig_shape[-1] == K, (orig_shape, K)
    Kp, Np = params.w1.shape
    itemsize = jnp.dtype(x.dtype).itemsize
    w_bytes = 2  # bf16 weights

    x2d = x.reshape(-1, K)
    M = x2d.shape[0]
    if Kp != K:
        # Zero-pad the contraction dim (required for exactness). Rows are NOT
        # padded: the ragged last row block reads undefined rows whose outputs
        # are never written back.
        x2d = jnp.zeros((M, Kp), x.dtype).at[:, :K].set(x2d)

    # Row tile: large (amortizes ~0.35us/step pipeline overhead, better HBM
    # streaming), multiple of 8 sublanes, and >= 2 row blocks when possible so
    # the "parallel" M axis shards across both v7x TensorCores.
    tm = _round_up(max(8, min(tm, _round_up(M, 8))), 8)
    if pl.cdiv(M, tm) < 2 and tm >= 16:
        tm = _round_up(pl.cdiv(M, 2), 8)
    grid_m = pl.cdiv(M, tm)

    vmem_cap = int(_vmem_capacity_bytes() * 0.85)   # per-chip, leave headroom

    # Conservative resident footprint: assume 2 pipeline buffers for the
    # constant-index weight blocks even though we request pl.Buffered(1).
    resident = 2 * (Kp * Np + Np * Np) * w_bytes + 2 * 2 * Np * 4
    per_step = 2 * tm * (Kp + Np) * itemsize        # x / out double buffers
    temps = 4 * tm * Np * 4                         # f32 h + bf16 copies headroom
    stream_w2 = force_stream_w2 or (resident + per_step + temps > vmem_cap)

    cost = pl.CostEstimate(
        flops=2 * M * Np * (Kp + Np),
        transcendentals=M * Np,
        bytes_accessed=(M * Kp + M * Np) * itemsize
        + (Kp * Np + Np * Np) * w_bytes + 2 * Np * 4,
    )

    def build(single_buffer_weights: bool):
        def wspec(shape, index_map):
            if single_buffer_weights:
                # Constant-index blocks: one VMEM buffer is enough.
                return pl.BlockSpec(shape, index_map,
                                    pipeline_mode=pl.Buffered(1))
            return pl.BlockSpec(shape, index_map)

        if not stream_w2:
            need = resident + per_step + temps + (4 << 20)
            return pl.pallas_call(
                _ffn_kernel_resident,
                out_shape=jax.ShapeDtypeStruct((M, Np), x.dtype),
                grid=(grid_m,),
                in_specs=[
                    pl.BlockSpec((tm, Kp), lambda i: (i, 0)),   # x (pipelined)
                    wspec((Kp, Np), lambda i: (0, 0)),          # w1 (resident)
                    wspec((1, Np), lambda i: (0, 0)),           # b1
                    wspec((Np, Np), lambda i: (0, 0)),          # w2 (resident)
                    wspec((1, Np), lambda i: (0, 0)),           # b2
                ],
                out_specs=pl.BlockSpec((tm, Np), lambda i: (i, 0)),
                compiler_params=pltpu.CompilerParams(
                    dimension_semantics=("parallel",),
                    vmem_limit_bytes=int(min(max(need, 32 << 20), vmem_cap)),
                ),
                cost_estimate=cost,
            )

        # ---- N-tiled fallback: stream w2 / b2 column blocks -----------------
        # TODO(synk): for huge K*N where even w1 is not VMEM-resident, add a
        # hidden-dim-tiled path that streams w1 columns / w2 rows with an f32
        # output accumulator.
        tn_ = max(128, min(_round_up(tn, 128), Np))
        grid_n = pl.cdiv(Np, tn_)
        need = (2 * Kp * Np * w_bytes + 2 * Np * 4        # resident w1 / b1
                + 2 * (Np * tn_ * w_bytes + tn_ * 4)      # streamed w2 / b2
                + 2 * tm * (Kp + tn_) * itemsize          # x / out buffers
                + tm * Np * 2                             # h scratch (bf16)
                + 4 * tm * Np * 4                         # f32 temporaries
                + (4 << 20))
        return pl.pallas_call(
            _ffn_kernel_stream_w2,
            out_shape=jax.ShapeDtypeStruct((M, Np), x.dtype),
            grid=(grid_m, grid_n),
            in_specs=[
                pl.BlockSpec((tm, Kp), lambda i, j: (i, 0)),    # x
                wspec((Kp, Np), lambda i, j: (0, 0)),           # w1 (resident)
                wspec((1, Np), lambda i, j: (0, 0)),            # b1
                pl.BlockSpec((Np, tn_), lambda i, j: (0, j)),   # w2 (streamed)
                pl.BlockSpec((1, tn_), lambda i, j: (0, j)),    # b2 (streamed)
            ],
            out_specs=pl.BlockSpec((tm, tn_), lambda i, j: (i, j)),
            scratch_shapes=[pltpu.VMEM((tm, Np), jnp.bfloat16)],
            compiler_params=pltpu.CompilerParams(
                dimension_semantics=("parallel", "arbitrary"),
                vmem_limit_bytes=int(min(max(need, 32 << 20), vmem_cap)),
            ),
            cost_estimate=cost,
        )

    args = (x2d, params.w1, params.b1, params.w2, params.b2)
    try:
        out = build(single_buffer_weights=True)(*args)
    except Exception:
        # This JAX/Mosaic version rejected pl.Buffered(1): fall back to the
        # default double-buffered constant blocks (correct, larger footprint).
        out = build(single_buffer_weights=False)(*args)

    if Np != N:
        out = out[:, :N]
    return out.reshape(*orig_shape[:-1], N)


# ---------------------------------------------------------------------------
# References
# ---------------------------------------------------------------------------
def _reference_ffn(x, w1, b1, w2, b2):
    h = x @ w1 + b1
    h = h * jax.nn.sigmoid(h)
    return h @ w2 + b2


def _reference_ffn_bf16(x, w1, b1, w2, b2):
    # Same rounding points as the kernel: bf16 MXU operands, f32 accumulation,
    # f32 biases / activation.
    bf = jnp.bfloat16
    h = jnp.dot(x.astype(bf), w1.astype(bf),
                preferred_element_type=jnp.float32) + b1
    h = h * jax.nn.sigmoid(h)
    return jnp.dot(h.astype(bf), w2.astype(bf),
                   preferred_element_type=jnp.float32) + b2


if __name__ == "__main__":
    key = jax.random.PRNGKey(0)
    (k_x, k_w1, k_b1, k_w2, k_b2,
     k_w1b, k_b1b, k_w2b, k_b2b) = jax.random.split(key, 9)

    # Small shapes consistent with the module: X = (batch, seq, in_features).
    batch, seq, in_features, out_features = 2, 8, 32, 32
    x = jax.random.normal(k_x, (batch, seq, in_features), dtype=jnp.float32)

    lim1 = 1.0 / (in_features ** 0.5)
    lim2 = 1.0 / (out_features ** 0.5)
    w1 = jax.random.uniform(k_w1, (in_features, out_features),
                            minval=-lim1, maxval=lim1, dtype=jnp.float32)
    b1 = jax.random.uniform(k_b1, (out_features,),
                            minval=-lim1, maxval=lim1, dtype=jnp.float32)
    w2 = jax.random.uniform(k_w2, (out_features, out_features),
                            minval=-lim2, maxval=lim2, dtype=jnp.float32)
    b2 = jax.random.uniform(k_b2, (out_features,),
                            minval=-lim2, maxval=lim2, dtype=jnp.float32)

    params = prepare_ffn_params(w1, b1, w2, b2)
    y = jax.block_until_ready(position_wise_ffn(x, params))
    assert y.shape == (batch, seq, out_features)
    # Tight check vs a reference with the same bf16 rounding points.
    assert jnp.allclose(y, _reference_ffn_bf16(x, w1, b1, w2, b2),
                        atol=5e-3, rtol=5e-3), "mismatch vs bf16 reference"
    # Loose sanity check vs the full-f32 reference (bf16 MXU operands).
    assert jnp.allclose(y, _reference_ffn(x, w1, b1, w2, b2),
                        atol=5e-2, rtol=5e-2), "mismatch vs f32 reference"

    # Also exercise the N-tiled weight-streaming path (selected automatically
    # when resident weights would not fit the per-chip VMEM budget).
    out_big = 256
    limb = 1.0 / (out_big ** 0.5)
    w1b = jax.random.uniform(k_w1b, (in_features, out_big),
                             minval=-lim1, maxval=lim1, dtype=jnp.float32)
    b1b = jax.random.uniform(k_b1b, (out_big,),
                             minval=-lim1, maxval=lim1, dtype=jnp.float32)
    w2b = jax.random.uniform(k_w2b, (out_big, out_big),
                             minval=-limb, maxval=limb, dtype=jnp.float32)
    b2b = jax.random.uniform(k_b2b, (out_big,),
                             minval=-limb, maxval=limb, dtype=jnp.float32)
    params_b = prepare_ffn_params(w1b, b1b, w2b, b2b)
    y2 = jax.block_until_ready(
        position_wise_ffn(x, params_b, tn=128, force_stream_w2=True))
    assert y2.shape == (batch, seq, out_big)
    assert jnp.allclose(y2, _reference_ffn_bf16(x, w1b, b1b, w2b, b2b),
                        atol=5e-3, rtol=5e-3), "mismatch on streamed-w2 path"

    print("KERNEL_OK")
</pallas_src>

<mosaic_0001>
module attributes {stable_mosaic.version = 11 : i64} {
  func.func @_ffn_kernel_resident(%arg0: i32, %arg1: memref<8x128xf32, #tpu.memory_space<vmem>>, %arg2: memref<128x128xbf16, #tpu.memory_space<vmem>>, %arg3: memref<1x128xf32, #tpu.memory_space<vmem>>, %arg4: memref<128x128xbf16, #tpu.memory_space<vmem>>, %arg5: memref<1x128xf32, #tpu.memory_space<vmem>>, %arg6: memref<8x128xf32, #tpu.memory_space<vmem>>) attributes {dimension_semantics = [#tpu.dimension_semantics<parallel>], iteration_bounds = array<i64: 2>, scalar_prefetch = 0 : i64, scratch_operands = 0 : i64, tpu.core_type = #tpu.core_type<tc>, window_params = [{transform_indices = @transform_0, window_bounds = array<i64: 8, 128>}, {pipeline_mode = #tpu.pipeline_mode<synchronous>, transform_indices = @transform_1, window_bounds = array<i64: 128, 128>}, {pipeline_mode = #tpu.pipeline_mode<synchronous>, transform_indices = @transform_2, window_bounds = array<i64: 1, 128>}, {pipeline_mode = #tpu.pipeline_mode<synchronous>, transform_indices = @transform_3, window_bounds = array<i64: 128, 128>}, {pipeline_mode = #tpu.pipeline_mode<synchronous>, transform_indices = @transform_4, window_bounds = array<i64: 1, 128>}, {transform_indices = @transform_5, window_bounds = array<i64: 8, 128>}]} {
    %c0 = arith.constant 0 : index
    %c0_0 = arith.constant 0 : index
    %0 = vector.load %arg1[%c0, %c0_0] : memref<8x128xf32, #tpu.memory_space<vmem>>, vector<8x128xf32>
    %1 = arith.truncf %0 : vector<8x128xf32> to vector<8x128xbf16>
    %c0_1 = arith.constant 0 : index
    %c0_2 = arith.constant 0 : index
    %2 = vector.load %arg2[%c0_1, %c0_2] : memref<128x128xbf16, #tpu.memory_space<vmem>>, vector<128x128xbf16>
    %cst = arith.constant dense<0.000000e+00> : vector<8x128xf32>
    %3 = tpu.matmul %1, %2, %cst {dimension_numbers = #tpu.dot_dimension_numbers<[1], [0], [0], [1], [0, 0, 1, 1], [], []>} : vector<8x128xbf16>, vector<128x128xbf16>, vector<8x128xf32> -> vector<8x128xf32>
    %c0_3 = arith.constant 0 : index
    %c0_4 = arith.constant 0 : index
    %4 = vector.load %arg3[%c0_3, %c0_4] : memref<1x128xf32, #tpu.memory_space<vmem>>, vector<1x128xf32>
    %5 = vector.broadcast %4 : vector<1x128xf32> to vector<8x128xf32>
    %6 = arith.addf %3, %5 : vector<8x128xf32>
    %7 = arith.negf %6 : vector<8x128xf32>
    %8 = math.exp %7 : vector<8x128xf32>
    %cst_5 = arith.constant 1.000000e+00 : f32
    %9 = vector.broadcast %cst_5 : f32 to vector<8x128xf32>
    %10 = arith.addf %9, %8 : vector<8x128xf32>
    %11 = arith.divf %9, %10 : vector<8x128xf32>
    %12 = arith.mulf %6, %11 : vector<8x128xf32>
    %13 = arith.truncf %12 : vector<8x128xf32> to vector<8x128xbf16>
    %c0_6 = arith.constant 0 : index
    %c0_7 = arith.constant 0 : index
    %14 = vector.load %arg4[%c0_6, %c0_7] : memref<128x128xbf16, #tpu.memory_space<vmem>>, vector<128x128xbf16>
    %cst_8 = arith.constant dense<0.000000e+00> : vector<8x128xf32>
    %15 = tpu.matmul %13, %14, %cst_8 {dimension_numbers = #tpu.dot_dimension_numbers<[1], [0], [0], [1], [0, 0, 1, 1], [], []>} : vector<8x128xbf16>, vector<128x128xbf16>, vector<8x128xf32> -> vector<8x128xf32>
    %c0_9 = arith.constant 0 : index
    %c0_10 = arith.constant 0 : index
    %16 = vector.load %arg5[%c0_9, %c0_10] : memref<1x128xf32, #tpu.memory_space<vmem>>, vector<1x128xf32>
    %17 = vector.broadcast %16 : vector<1x128xf32> to vector<8x128xf32>
    %18 = arith.addf %15, %17 : vector<8x128xf32>
    %c0_11 = arith.constant 0 : index
    %c0_12 = arith.constant 0 : index
    %19 = vector.load %arg6[%c0_11, %c0_12] : memref<8x128xf32, #tpu.memory_space<vmem>>, vector<8x128xf32>
    tpu.vector_store %arg6[%c0_11, %c0_12], %18 {strides = array<i32>} : memref<8x128xf32, #tpu.memory_space<vmem>>, vector<8x128xf32>,
    return
  }
  func.func @transform_0(%arg0: i32) -> (i32, i32) {
    %c0_i32 = arith.constant 0 : i32
    %c0_i32_0 = arith.constant 0 : i32
    return %arg0, %c0_i32 : i32, i32
  }
  func.func @transform_1(%arg0: i32) -> (i32, i32) {
    %c0_i32 = arith.constant 0 : i32
    %c0_i32_0 = arith.constant 0 : i32
    %c0_i32_1 = arith.constant 0 : i32
    return %c0_i32, %c0_i32_0 : i32, i32
  }
  func.func @transform_2(%arg0: i32) -> (i32, i32) {
    %c0_i32 = arith.constant 0 : i32
    %c0_i32_0 = arith.constant 0 : i32
    %c0_i32_1 = arith.constant 0 : i32
    return %c0_i32, %c0_i32_0 : i32, i32
  }
  func.func @transform_3(%arg0: i32) -> (i32, i32) {
    %c0_i32 = arith.constant 0 : i32
    %c0_i32_0 = arith.constant 0 : i32
    %c0_i32_1 = arith.constant 0 : i32
    return %c0_i32, %c0_i32_0 : i32, i32
  }
  func.func @transform_4(%arg0: i32) -> (i32, i32) {
    %c0_i32 = arith.constant 0 : i32
    %c0_i32_0 = arith.constant 0 : i32
    %c0_i32_1 = arith.constant 0 : i32
    return %c0_i32, %c0_i32_0 : i32, i32
  }
  func.func @transform_5(%arg0: i32) -> (i32, i32) {
    %c0_i32 = arith.constant 0 : i32
    %c0_i32_0 = arith.constant 0 : i32
    return %arg0, %c0_i32 : i32, i32
  }
}

module attributes {stable_mosaic.version = 11 : i64} {
  func.func @_ffn_kernel_resident(%arg0: i32, %arg1: memref<8x128xf32, #tpu.memory_space<vmem>>, %arg2: memref<128x128xbf16, #tpu.memory_space<vmem>>, %arg3: memref<1x128xf32, #tpu.memory_space<vmem>>, %arg4: memref<128x128xbf16, #tpu.memory_space<vmem>>, %arg5: memref<1x128xf32, #tpu.memory_space<vmem>>, %arg6: memref<8x128xf32, #tpu.memory_space<vmem>>) attributes {dimension_semantics = [#tpu.dimension_semantics<parallel>], iteration_bounds = array<i64: 2>, scalar_prefetch = 0 : i64, scratch_operands = 0 : i64, tpu.core_type = #tpu.core_type<tc>, window_params = [{transform_indices = @transform_0, window_bounds = array<i64: 8, 128>}, {pipeline_mode = #tpu.pipeline_mode<synchronous>, transform_indices = @transform_1, window_bounds = array<i64: 128, 128>}, {pipeline_mode = #tpu.pipeline_mode<synchronous>, transform_indices = @transform_2, window_bounds = array<i64: 1, 128>}, {pipeline_mode = #tpu.pipeline_mode<synchronous>, transform_indices = @transform_3, window_bounds = array<i64: 128, 128>}, {pipeline_mode = #tpu.pipeline_mode<synchronous>, transform_indices = @transform_4, window_bounds = array<i64: 1, 128>}, {transform_indices = @transform_5, window_bounds = array<i64: 8, 128>}]} {
    %c0 = arith.constant 0 : index
    %c0_0 = arith.constant 0 : index
    %0 = vector.load %arg1[%c0, %c0_0] : memref<8x128xf32, #tpu.memory_space<vmem>>, vector<8x128xf32>
    %1 = arith.truncf %0 : vector<8x128xf32> to vector<8x128xbf16>
    %c0_1 = arith.constant 0 : index
    %c0_2 = arith.constant 0 : index
    %2 = vector.load %arg2[%c0_1, %c0_2] : memref<128x128xbf16, #tpu.memory_space<vmem>>, vector<128x128xbf16>
    %cst = arith.constant dense<0.000000e+00> : vector<8x128xf32>
    %3 = tpu.matmul %1, %2, %cst {dimension_numbers = #tpu.dot_dimension_numbers<[1], [0], [0], [1], [0, 0, 1, 1], [], []>} : vector<8x128xbf16>, vector<128x128xbf16>, vector<8x128xf32> -> vector<8x128xf32>
    %c0_3 = arith.constant 0 : index
    %c0_4 = arith.constant 0 : index
    %4 = vector.load %arg3[%c0_3, %c0_4] : memref<1x128xf32, #tpu.memory_space<vmem>>, vector<1x128xf32>
    %5 = vector.broadcast %4 : vector<1x128xf32> to vector<8x128xf32>
    %6 = arith.addf %3, %5 : vector<8x128xf32>
    %7 = arith.negf %6 : vector<8x128xf32>
    %8 = math.exp %7 : vector<8x128xf32>
    %cst_5 = arith.constant 1.000000e+00 : f32
    %9 = vector.broadcast %cst_5 : f32 to vector<8x128xf32>
    %10 = arith.addf %9, %8 : vector<8x128xf32>
    %11 = arith.divf %9, %10 : vector<8x128xf32>
    %12 = arith.mulf %6, %11 : vector<8x128xf32>
    %13 = arith.truncf %12 : vector<8x128xf32> to vector<8x128xbf16>
    %c0_6 = arith.constant 0 : index
    %c0_7 = arith.constant 0 : index
    %14 = vector.load %arg4[%c0_6, %c0_7] : memref<128x128xbf16, #tpu.memory_space<vmem>>, vector<128x128xbf16>
    %cst_8 = arith.constant dense<0.000000e+00> : vector<8x128xf32>
    %15 = tpu.matmul %13, %14, %cst_8 {dimension_numbers = #tpu.dot_dimension_numbers<[1], [0], [0], [1], [0, 0, 1, 1], [], []>} : vector<8x128xbf16>, vector<128x128xbf16>, vector<8x128xf32> -> vector<8x128xf32>
    %c0_9 = arith.constant 0 : index
    %c0_10 = arith.constant 0 : index
    %16 = vector.load %arg5[%c0_9, %c0_10] : memref<1x128xf32, #tpu.memory_space<vmem>>, vector<1x128xf32>
    %17 = vector.broadcast %16 : vector<1x128xf32> to vector<8x128xf32>
    %18 = arith.addf %15, %17 : vector<8x128xf32>
    %c0_11 = arith.constant 0 : index
    %c0_12 = arith.constant 0 : index
    %19 = vector.load %arg6[%c0_11, %c0_12] : memref<8x128xf32, #tpu.memory_space<vmem>>, vector<8x128xf32>
    tpu.vector_store %arg6[%c0_11, %c0_12], %18 {strides = array<i32>} : memref<8x128xf32, #tpu.memory_space<vmem>>, vector<8x128xf32>,
    return
  }
  func.func @transform_0(%arg0: i32) -> (i32, i32) {
    %c0_i32 = arith.constant 0 : i32
    %c0_i32_0 = arith.constant 0 : i32
    return %arg0, %c0_i32 : i32, i32
  }
  func.func @transform_1(%arg0: i32) -> (i32, i32) {
    %c0_i32 = arith.constant 0 : i32
    %c0_i32_0 = arith.constant 0 : i32
    %c0_i32_1 = arith.constant 0 : i32
    return %c0_i32, %c0_i32_0 : i32, i32
  }
  func.func @transform_2(%arg0: i32) -> (i32, i32) {
    %c0_i32 = arith.constant 0 : i32
    %c0_i32_0 = arith.constant 0 : i32
    %c0_i32_1 = arith.constant 0 : i32
    return %c0_i32, %c0_i32_0 : i32, i32
  }
  func.func @transform_3(%arg0: i32) -> (i32, i32) {
    %c0_i32 = arith.constant 0 : i32
    %c0_i32_0 = arith.constant 0 : i32
    %c0_i32_1 = arith.constant 0 : i32
    return %c0_i32, %c0_i32_0 : i32, i32
  }
  func.func @transform_4(%arg0: i32) -> (i32, i32) {
    %c0_i32 = arith.constant 0 : i32
    %c0_i32_0 = arith.constant 0 : i32
    %c0_i32_1 = arith.constant 0 : i32
    return %c0_i32, %c0_i32_0 : i32, i32
  }
  func.func @transform_5(%arg0: i32) -> (i32, i32) {
    %c0_i32 = arith.constant 0 : i32
    %c0_i32_0 = arith.constant 0 : i32
    return %arg0, %c0_i32 : i32, i32
  }
}

</mosaic_0001>

<bundles_post_ra>
// kernel: tpu_custom_call.1
= control target key start
LH: loop header
LB: loop body
LE: loop exit
PB: predicated region body
PF: predicated region fallthrough
CT: control target
= control target key end

     0   :  { %10 = vsyncpa [#allocation3], 0  ;;  %s1168_s0 = inlined_call_operand.hbm [shape: f32[16,128], index: 0, kind: input, shape index: {}]   ;;  %s1169_s1 = inlined_call_operand.hbm [shape: bf16[128,128], index: 1, kind: input, shape index: {}]   ;;  %s1170_s2 = inlined_call_operand.vmem [shape: f32[1,128], index: 2, kind: input, shape index: {}]   ;;  %s1171_s3 = inlined_call_operand.hbm [shape: bf16[128,128], index: 3, kind: input, shape index: {}]   ;;  %s1172_s4 = inlined_call_operand.vmem [shape: f32[1,128], index: 4, kind: input, shape index: {}]   ;;  %s1173_s5 = inlined_call_operand.hbm [shape: f32[16,128], index: 5, kind: output, shape index: {}]  }
   0x1   :  { %12 = vsyncpa [#allocation3 + $0x1], 0 }
   0x2   :  { %13 = vsyncpa [#allocation6], 0 }
   0x3   :  { %14 = vsyncpa [#allocation4], 0 }
   0x4   :  { %16 = vsyncpa [#allocation4 + $0x1], 0  ;;  %s978_s18 = smov 0   ;;  %s980_s19 = smov 0  }
   0x5   :  { %s982_s20 = smov 0   ;;  %s984_s21 = smov 0  }
   0x6 LB: > { %s999_s22 = sadd.s32 4294967295, %s938_s21   ;;  %s606_s23 = sadd.s32 4294967294, %s938_s21   ;;  %s938_s21 = sphi %s984_s21, %s1195_s21   ;;  %s934_s20 = sphi %s982_s20, %s1194_s20   ;;  %s930_s19 = sphi %s980_s19, %s1193_s19   ;;  %s926_s18 = sphi %s978_s18, %s1192_s18  }
   0x7   : > { %p42_p0 = scmp.ne.s32.totalorder %s930_s19, %s926_s18  ;;  %p1174_p1 = scmp.eq.s32.totalorder %s999_s22, 0 }
   0x8   : > { %p156_p3 = scmp.eq.s32.totalorder %s606_s23, 1  ;;  %p607_p5 = scmp.ge.s32.totalorder %s938_s21, 1 }
   0x9   : > { %p1008_p4 = por %p1174_p1, %p42_p0  ;;  %p163_p7 = scmp.lt.s32.totalorder %s938_s21, 3 }
   0xa   : > { %p1013_p6 = por %p156_p3, %p42_p0  ;;  %s940_s27 = smov [#allocation5]  }
   0xb   : > { %s1178_s24 = scalar_select %p1008_p4, 1, 0 }
   0xc   : > { %s1179_s25 = scalar_select %p1013_p6, 1, 0 }
   0xd   : > { %p1018_p8 = pnand %p607_p5, %p163_p7  ;;  %s175_s28 = sshll.u32 %s940_s27, 4  ;;  %s176_s28 = int_to_ptr.vmem [resolvable:$true] %s175_s28 }
   0xe   : > { %s941_s30 = smov [#allocation7]   ;;  %s801_s7 = scalar_lea.vmem %s176_s28, 1024 }
   0xf   : > { %s1180_s26 = scalar_select %p1018_p8, 1, 0 }
  0x10   : > { %p711_p9 = pneg %p1018_p8  ;;  %s191_s6 = sshll.u32 %s941_s30, 4  ;;  %s192_s6 = int_to_ptr.vmem [resolvable:$true] %s191_s6 }
  0x11   : > { %p802_p13 = scmp.ne.s32.totalorder %s176_s28, %s801_s7  ;;  %p809_p5 = scmp.lt.s32.totalorder %s176_s28, %s176_s28 }
  0x12   : > { %p1027_p11 = pnand %p711_p9, %p1174_p1  ;;  %p810_p7 = scmp.lt.s32.totalorder %s801_s7, %s801_s7 }
  0x14   : > { %p792_p12 = pneg %p1027_p11  ;;  %p811_p10 = por %p810_p7, %p809_p5 }
  0x16   : > { %p804_p0 = pnand %p802_p13, %p792_p12 }
  0x18   : > { %p805_p3 = pneg %p804_p0 }
  0x1a   : > { %p812_p9 = pnand %p811_p10, %p805_p3 }
  0x1c   : > { %815 = shalt.err (!%p812_p9)
}
  0x1d   : > { %s942_s8 = smov 64   ;;  %s943_s9 = smov 4  }
  0x1e   : > { %714 = dma.hbm_to_vmem [thread:$0]  (!%p1027_p11), %s1169_s1, 1024, %s176_s28, [#allocation6], %s942_s8, %s942_s8, %s943_s9  }
  0x1f   : > { %s827_s12 = scalar_lea.vmem %s192_s6, 1024  ;;  %p835_p2 = scmp.lt.s32.totalorder %s192_s6, %s192_s6 }
  0x20   : > { %p828_p1 = scmp.ne.s32.totalorder %s192_s6, %s827_s12  ;;  %p836_p6 = scmp.lt.s32.totalorder %s827_s12, %s827_s12 }
  0x22   : > { %p830_p13 = pnand %p828_p1, %p792_p12  ;;  %p837_p5 = por %p836_p6, %p835_p2 }
  0x24   : > { %p831_p0 = pneg %p830_p13 }
  0x26   : > { %p838_p10 = pnand %p837_p5, %p831_p0 }
  0x28   : > { %841 = shalt.err (!%p838_p10)
}
  0x29   : > { %717 = dma.hbm_to_vmem [thread:$0]  (!%p1027_p11), %s1171_s3, 1024, %s192_s6, [#allocation6], %s942_s8, %s942_s8, %s943_s9  }
  0x2a   : > { %s1050_s15 = sadd.s32 1, %s938_s21   ;;  %s29_s16 = sadd.s32 1, %s934_s20 }
  0x2b   : > { %s26_s17 = ssub.s32 %s938_s21, %s1050_s15  ;;  %p36_p1 = scmp.ne.s32.totalorder %s934_s20, %s930_s19 }
  0x2c   : > { %p27_p2 = scmp.eq.s32.totalorder %s26_s17, 0  ;;  %p37_p6 = scmp.eq.s32.totalorder %s938_s21, 0 }
  0x2d   : > { %p1182_p12 = scmp.eq.s32.totalorder %s999_s22, 1  ;;  %p728_p7 = scmp.lt.s32.totalorder %s938_s21, 2 }
  0x2e   : > { %s1066_s27 = scalar_select %p27_p2, %s934_s20, %s29_s16  }
  0x2f   : > { %p1060_p3 = por %p1182_p12, %p36_p1  ;;  %p38_p9 = por %p37_p6, %p36_p1 }
  0x30   : > { %s208_s28 = sand.u32 1, %s934_s20   ;;  %s612_s30 = sshll.u32 %s938_s21, 7 }
  0x31   : > { %s1183_s23 = scalar_select %p1060_p3, 1, 0 }
  0x32   : > { %s611_s29 = sshll.u32 %s208_s28, 3  ;;  %s1073_s8 = scalar_lea.hbm %s1168_s0, %s612_s30 }
  0x33   : > { %s212_s9 = scalar_lea.vmem [#allocation2], %s611_s29  ;;  %p1075_p11 = pnand %p728_p7, %p38_p9 }
  0x34   : > { %s219_s10 = sshll.u32 %s212_s9, 4  ;;  %s209_s12 = scalar_lea.sflag [#allocation3], %s208_s28  ;;  %s220_s10 = int_to_ptr.vmem [resolvable:$true] %s219_s10 }
  0x35   : > { %s842_s13 = scalar_lea.hbm %s1073_s8, 128  ;;  %p844_p0 = pneg %p1075_p11 }
  0x36   : > { %p843_p13 = scmp.ne.s32.totalorder %s1073_s8, %s842_s13  ;;  %s847_s17 = scalar_lea.hbm %s1168_s0, 256 }
  0x37   : > { %p848_p1 = scmp.lt.s32.totalorder %s1073_s8, %s1168_s0  ;;  %p849_p2 = scmp.lt.s32.totalorder %s847_s17, %s842_s13 }
  0x38   : > { %p845_p5 = pnand %p844_p0, %p843_p13 }
  0x39   : > { %p850_p6 = por %p849_p2, %p848_p1 }
  0x3a   : > { %p846_p10 = pneg %p845_p5 }
  0x3c   : > { %p851_p12 = pnand %p850_p6, %p846_p10 }
  0x3e   : > { %854 = shalt.err (!%p851_p12)
}
  0x3f   : > { %s855_s6 = scalar_lea.vmem %s220_s10, 128  ;;  %s944_s28 = smov [#allocation2]  }
  0x40   : > { %p856_p7 = scmp.ne.s32.totalorder %s220_s10, %s855_s6  ;;  %s860_s7 = sshll.u32 %s944_s28, 4  ;;  %s861_s7 = int_to_ptr.vmem [resolvable:$false] %s860_s7 }
  0x41   : > { %s862_s9 = scalar_lea.vmem %s861_s7, 256  ;;  %p863_p13 = scmp.lt.s32.totalorder %s220_s10, %s861_s7 }
  0x42   : > { %p858_p9 = pnand %p856_p7, %p844_p0  ;;  %p864_p5 = scmp.lt.s32.totalorder %s862_s9, %s855_s6 }
  0x44   : > { %p859_p3 = pneg %p858_p9  ;;  %p865_p4 = por %p864_p5, %p863_p13 }
  0x46   : > { %p866_p8 = pnand %p865_p4, %p859_p3 }
  0x48   : > { %869 = shalt.err (!%p866_p8)
}
  0x49   : > { %721 = dma.hbm_to_vmem [thread:$0]  (!%p1075_p11), %s1073_s8, 128, %s220_s10, %s209_s12  }
  0x4a   : > { %p1185_p10 = scmp.ne.s32.totalorder %s1180_s26, 0 }
  0x4b   : > { %s1096_s13 = sand.u32 (!%p1185_p10), 1, %s930_s19   ;;  %p1186_p4 = scmp.ne.s32.totalorder (!%p1185_p10), %s1178_s24, 0 }
  0x4c   : > { %228 = sbr.rel (%p1185_p10) target bundleno = 559 (0x22f), region = 40  ;;  %s614_s14 = sshll.u32 (!%p1185_p10), %s1096_s13, 3 }
  0x4d   : > { %s231_s16 = scalar_lea.sflag (!%p1185_p10), [#allocation3], %s1096_s13  ;;  %s1102_s17 = scalar_lea.vmem (!%p1185_p10), [#allocation2], %s614_s14 }
  0x51   : > { %913 = dma.done.wait (%p1186_p4), %s231_s16, 128  }
  0x52   : > { %915 = vsyncadd (%p1186_p4), %s231_s16, 4294967168  ;;  %p1187_p8 = scmp.eq.s32.totalorder %s999_s22, 0 }
  0x54   : > { %917 = dma.done.wait (%p1187_p8), [#allocation6], 2048   ;;  %p1188_p3 = pmov %p1187_p8 }
  0x55   : > { %v945_v0 = vmov 0.0   ;;  %vm946_vm0 = vmmov 0   ;;  %v770_v1 = vld [vmem:[#allocation5 + $0x38] sm:$0xff]   ;;  %v771_v2 = vld [vmem:[#allocation5 + $0x30] sm:$0xff]   ;;  %v772_v3 = vld [vmem:[#allocation5 + $0x28] sm:$0xff]   ;;  %s638_s11 = sshll.u32 %s999_s22, 7 }
  0x56   : > { %919 = vsyncadd (%p1188_p3), [#allocation6], 4294965248  ;;  %659 = vmatprep.subr.bf16.mxu0 %v945_v0  ;;  %675 = vmatprep.mubr.msk.bf16.mxu0 %vm946_vm0, %v945_v0  ;;  %v773_v4 = vld [vmem:[#allocation5 + $0x20] sm:$0xff]   ;;  %v774_v5 = vld [vmem:[#allocation5 + $0x18] sm:$0xff]   ;;  %s268_s12 = scalar_lea.vmem [#allocation8], %s614_s14  ;;  %s1125_s28 = scalar_lea.hbm %s1173_s5, %s638_s11 }
  0x57   : > { %679 = vmatprep.subr.bf16.mxu1 %v945_v0  ;;  %695 = vmatprep.mubr.msk.bf16.mxu1 %vm946_vm0, %v945_v0  ;;  %v775_v6 = vld [vmem:[#allocation5 + $0x10] sm:$0xff]   ;;  %v776_v7 = vld [vmem:[#allocation5 + $0x8] sm:$0xff]   ;;  %v777_v8 = vld [vmem:[#allocation5] sm:$0xff]   ;;  %s517_s30 = sshll.u32 %s268_s12, 4  ;;  %s504_s7 = scalar_lea.sflag [#allocation4], %s1096_s13  ;;  %s1127_s30 = int_to_ptr.vmem [resolvable:$true] %s517_s30 }
  0x58   : > { %660 = vmatpush3.bf16.msra.mxu0 %v770_v1  ;;  %v270_v9 = vld [vmem:[%s1102_s17] sm:$0xff]  ;;  %v780_v13 = vld [vmem:[#allocation7 + $0x28] sm:$0xff]   ;;  %v781_v14 = vld [vmem:[#allocation7 + $0x20] sm:$0xff]   ;;  %s870_s22 = scalar_lea.vmem %s1127_s30, 128  ;;  %p1189_p0 = scmp.ne.s32.totalorder %s1183_s23, 0 }
  0x59   : > { %661 = vmatprep.subr.bf16.mxu0 %v945_v0  ;;  %v271_v10 = vpack.c.bf16 %v270_v9, %v270_v9  ;;  %v778_v11 = vld [vmem:[#allocation7 + $0x38] sm:$0xff]   ;;  %v779_v12 = vld [vmem:[#allocation7 + $0x30] sm:$0xff]   ;;  %v784_v17 = vld [vmem:[#allocation7 + $0x8] sm:$0xff]   ;;  %p871_p11 = scmp.ne.s32.totalorder %s1127_s30, %s870_s22  ;;  %s947_s9 = smov [#allocation8]  }
  0x5a   : > { %680 = vmatpush3.bf16.msra.mxu1 %v778_v11  ;;  %v782_v15 = vld [vmem:[#allocation7 + $0x18] sm:$0xff]   ;;  %v783_v16 = vld [vmem:[#allocation7 + $0x10] sm:$0xff]   ;;  %v785_v18 = vld [vmem:[#allocation7] sm:$0xff]   ;;  %s874_s14 = sshll.u32 %s947_s9, 4  ;;  %s875_s14 = int_to_ptr.vmem [resolvable:$false] %s874_s14 }
  0x5b   : > { %681 = vmatprep.subr.bf16.mxu1 %v945_v0  ;;  %v618_v19 = vld [vmem:[%s1170_s2] ss:$0 sm:$0xff]  ;;  %p872_p1 = pnand %p871_p11, %p1189_p0  ;;  %s876_s16 = scalar_lea.vmem %s875_s14, 256 }
  0x5c   : > { %662 = vmatpush3.bf16.msra.mxu0 %v771_v2  ;;  %v628_v31 = vld [vmem:[%s1172_s4] ss:$0 sm:$0xff]  ;;  %p877_p6 = scmp.lt.s32.totalorder %s1127_s30, %s875_s14  ;;  %p878_p12 = scmp.lt.s32.totalorder %s876_s16, %s870_s22 }
  0x5d   : > { %663 = vmatprep.subr.bf16.mxu0 %v945_v0  ;;  %p873_p2 = pneg %p872_p1 }
  0x5e   : > { %682 = vmatpush3.bf16.msra.mxu1 %v779_v12  ;;  %p879_p7 = por %p878_p12, %p877_p6 }
  0x5f   : > { %683 = vmatprep.subr.bf16.mxu1 %v945_v0 }
  0x60   : > { %664 = vmatpush3.bf16.msra.mxu0 %v772_v3  ;;  %p880_p9 = pnand %p879_p7, %p873_p2 }
  0x61   : > { %665 = vmatprep.subr.bf16.mxu0 %v945_v0 }
  0x62   : > { %684 = vmatpush3.bf16.msra.mxu1 %v780_v13 }
  0x63   : > { %685 = vmatprep.subr.bf16.mxu1 %v945_v0 }
  0x64   : > { %666 = vmatpush3.bf16.msra.mxu0 %v773_v4 }
  0x65   : > { %667 = vmatprep.subr.bf16.mxu0 %v945_v0 }
  0x66   : > { %686 = vmatpush3.bf16.msra.mxu1 %v781_v14 }
  0x67   : > { %687 = vmatprep.subr.bf16.mxu1 %v945_v0 }
  0x68   : > { %668 = vmatpush3.bf16.msra.mxu0 %v774_v5 }
  0x69   : > { %669 = vmatprep.subr.bf16.mxu0 %v945_v0 }
  0x6a   : > { %688 = vmatpush3.bf16.msra.mxu1 %v782_v15 }
  0x6b   : > { %689 = vmatprep.subr.bf16.mxu1 %v945_v0 }
  0x6c   : > { %670 = vmatpush3.bf16.msra.mxu0 %v775_v6 }
  0x6d   : > { %671 = vmatprep.subr.bf16.mxu0 %v945_v0 }
  0x6e   : > { %690 = vmatpush3.bf16.msra.mxu1 %v783_v16 }
  0x6f   : > { %691 = vmatprep.subr.bf16.mxu1 %v945_v0 }
  0x70   : > { %672 = vmatpush3.bf16.msra.mxu0 %v776_v7 }
  0x71   : > { %673 = vmatprep.subr.bf16.mxu0 %v945_v0 }
  0x72   : > { %692 = vmatpush3.bf16.msra.mxu1 %v784_v17 }
  0x73   : > { %693 = vmatprep.subr.bf16.mxu1 %v945_v0 }
  0x74   : > { %674 = vmatpush3.bf16.msra.mxu0 %v777_v8 }
  0x76   : > { %694 = vmatpush3.bf16.msra.mxu1 %v785_v18 }
  0x77   : > { %676 = vmatmul.mubr.bf16.vlgmr.msra.gmra.mxu0 %v271_v10 }
 0x137   : > { %v377_v20 = vpop.f32.mrf.mxu0 }
 0x138   : > { %v378_v21 = vadd.f32 %v618_v19, %v377_v20 }
 0x139   : > { %v677_v22 = vpop.f32.mrf.mxu0 }
 0x13a   : > { %v627_v23 = vmul.f32 -1.442695, %v378_v21 }
 0x13b   : > { %v380_v24 = vpop.f32.mrf.mxu0 }
 0x13c   : > { %786 = vpow2.f32 %v627_v23 }
 0x13d   : > { %v678_v25 = vpop.f32.mrf.mxu0 }
 0x149   : > { %v787_v26 = vpop.eup %786 }
 0x14a   : > { %v386_v27 = vadd.f32 1.0, %v787_v26 }
 0x14c   : > { %788 = vrcp.f32 %v386_v27 }
 0x159   : > { %v789_v28 = vpop.eup %788 }
 0x15a   : > { %v389_v29 = vmul.f32 %v789_v28, %v378_v21 }
 0x15c   : > { %v390_v30 = vpack.c.bf16 %v389_v29, %v389_v29 }
 0x15e   : > { %696 = vmatmul.mubr.bf16.vlgmr.msra.gmra.mxu1 %v390_v30 }
 0x21e   : > { %v496_v32 = vpop.f32.mrf.mxu1 }
 0x21f   : > { %v497_v33 = vadd.f32 %v628_v31, %v496_v32 }
 0x220   : > { %v697_v34 = vpop.f32.mrf.mxu1 }
 0x221   : > { %502 = vst [vmem:[%s268_s12] sm:$0xff] %v497_v33 }
 0x222   : > { %v499_v35 = vpop.f32.mrf.mxu1 }
 0x223   : > { %883 = shalt.err (!%p880_p9)
}
 0x224   : > { %s884_s17 = scalar_lea.hbm %s1125_s28, 128  ;;  %s888_s26 = scalar_lea.hbm %s1173_s5, 256 }
 0x225   : > { %p885_p13 = scmp.ne.s32.totalorder %s1125_s28, %s884_s17  ;;  %p889_p4 = scmp.lt.s32.totalorder %s1125_s28, %s1173_s5 }
 0x226   : > { %p890_p8 = scmp.lt.s32.totalorder %s888_s26, %s884_s17 }
 0x227   : > { %p886_p5 = pnand %p885_p13, %p1189_p0 }
 0x228   : > { %p891_p3 = por %p890_p8, %p889_p4 }
 0x229   : > { %p887_p10 = pneg %p886_p5 }
 0x22b   : > { %p892_p11 = pnand %p891_p3, %p887_p10 }
 0x22d   : > { %895 = shalt.err (!%p892_p11)
}
 0x22e   : > { %709 = dma.vmem_to_hbm [thread:$0]  (%p1189_p0), %s1127_s30, 128, %s1125_s28, %s504_s7   ;;  %v698_v36 = vpop.f32.mrf.mxu1 }
 0x22f PF: > { %s529_s11 = sand.u32 1, %s926_s18   ;;  %p1190_p1 = scmp.ne.s32.totalorder %s1179_s25, 0 }
 0x230   : > { %p1191_p2 = scmp.ge.s32.totalorder %s938_s21, 2  ;;  %s530_s12 = scalar_lea.sflag [#allocation4], %s529_s11 }
 0x232   : > { %p723_p6 = pnand %p1191_p2, %p1190_p1 }
 0x234   : > { %p724_p12 = pneg %p723_p6 }
 0x236   : > { %921 = dma.done.wait (%p724_p12), %s530_s12, 128  }
 0x237   : > { %923 = vsyncadd (%p724_p12), %s530_s12, 4294967168  ;;  %p19_p7 = scmp.ge.s32.totalorder %s1050_s15, 4   ;;  %s1192_s18 = smov %s930_s19 }
 0x238   : > { %s1193_s19 = smov %s934_s20  ;;  %s1194_s20 = smov %s1066_s27 }
 0x239   : > { %s1195_s21 = smov %s1050_s15  ;;  %21 = sbr.rel (!%p19_p7) target bundleno = 6 (0x6), region = 93 }
 0x23e   :  { %535 = vsyncpa [#allocation3], 1 }
 0x23f   :  { %537 = vsyncpa [#allocation3 + $0x1], 1 }
 0x240   :  { %538 = vsyncpa [#allocation6], 1 }
 0x241   :  { %539 = vsyncpa [#allocation4], 1 }
 0x242   :  { %541 = vsyncpa [#allocation4 + $0x1], 1 }

// kernel: tpu_custom_call.1
= control target key start
LH: loop header
LB: loop body
LE: loop exit
PB: predicated region body
PF: predicated region fallthrough
CT: control target
= control target key end

     0   :  { %10 = vsyncpa [#allocation3], 0  ;;  %s1168_s0 = inlined_call_operand.hbm [shape: f32[16,128], index: 0, kind: input, shape index: {}]   ;;  %s1169_s1 = inlined_call_operand.hbm [shape: bf16[128,128], index: 1, kind: input, shape index: {}]   ;;  %s1170_s2 = inlined_call_operand.vmem [shape: f32[1,128], index: 2, kind: input, shape index: {}]   ;;  %s1171_s3 = inlined_call_operand.hbm [shape: bf16[128,128], index: 3, kind: input, shape index: {}]   ;;  %s1172_s4 = inlined_call_operand.vmem [shape: f32[1,128], index: 4, kind: input, shape index: {}]   ;;  %s1173_s5 = inlined_call_operand.hbm [shape: f32[16,128], index: 5, kind: output, shape index: {}]  }
   0x1   :  { %12 = vsyncpa [#allocation3 + $0x1], 0 }
   0x2   :  { %13 = vsyncpa [#allocation6], 0 }
   0x3   :  { %14 = vsyncpa [#allocation4], 0 }
   0x4   :  { %16 = vsyncpa [#allocation4 + $0x1], 0  ;;  %s978_s18 = smov 0   ;;  %s980_s19 = smov 0  }
   0x5   :  { %s982_s20 = smov 0   ;;  %s984_s21 = smov 0  }
   0x6 LB: > { %s999_s22 = sadd.s32 4294967295, %s938_s21   ;;  %s606_s23 = sadd.s32 4294967294, %s938_s21   ;;  %s938_s21 = sphi %s984_s21, %s1195_s21   ;;  %s934_s20 = sphi %s982_s20, %s1194_s20   ;;  %s930_s19 = sphi %s980_s19, %s1193_s19   ;;  %s926_s18 = sphi %s978_s18, %s1192_s18  }
   0x7   : > { %p42_p0 = scmp.ne.s32.totalorder %s930_s19, %s926_s18  ;;  %p1174_p1 = scmp.eq.s32.totalorder %s999_s22, 0 }
   0x8   : > { %p156_p3 = scmp.eq.s32.totalorder %s606_s23, 1  ;;  %p607_p5 = scmp.ge.s32.totalorder %s938_s21, 1 }
   0x9   : > { %p1008_p4 = por %p1174_p1, %p42_p0  ;;  %p163_p7 = scmp.lt.s32.totalorder %s938_s21, 3 }
   0xa   : > { %p1013_p6 = por %p156_p3, %p42_p0  ;;  %s940_s27 = smov [#allocation5]  }
   0xb   : > { %s1178_s24 = scalar_select %p1008_p4, 1, 0 }
   0xc   : > { %s1179_s25 = scalar_select %p1013_p6, 1, 0 }
   0xd   : > { %p1018_p8 = pnand %p607_p5, %p163_p7  ;;  %s175_s28 = sshll.u32 %s940_s27, 4  ;;  %s176_s28 = int_to_ptr.vmem [resolvable:$true] %s175_s28 }
   0xe   : > { %s941_s30 = smov [#allocation7]   ;;  %s801_s7 = scalar_lea.vmem %s176_s28, 1024 }
   0xf   : > { %s1180_s26 = scalar_select %p1018_p8, 1, 0 }
  0x10   : > { %p711_p9 = pneg %p1018_p8  ;;  %s191_s6 = sshll.u32 %s941_s30, 4  ;;  %s192_s6 = int_to_ptr.vmem [resolvable:$true] %s191_s6 }
  0x11   : > { %p802_p13 = scmp.ne.s32.totalorder %s176_s28, %s801_s7  ;;  %p809_p5 = scmp.lt.s32.totalorder %s176_s28, %s176_s28 }
  0x12   : > { %p1027_p11 = pnand %p711_p9, %p1174_p1  ;;  %p810_p7 = scmp.lt.s32.totalorder %s801_s7, %s801_s7 }
  0x14   : > { %p792_p12 = pneg %p1027_p11  ;;  %p811_p10 = por %p810_p7, %p809_p5 }
  0x16   : > { %p804_p0 = pnand %p802_p13, %p792_p12 }
  0x18   : > { %p805_p3 = pneg %p804_p0 }
  0x1a   : > { %p812_p9 = pnand %p811_p10, %p805_p3 }
  0x1c   : > { %815 = shalt.err (!%p812_p9)
}
  0x1d   : > { %s942_s8 = smov 64   ;;  %s943_s9 = smov 4  }
  0x1e   : > { %714 = dma.hbm_to_vmem [thread:$0]  (!%p1027_p11), %s1169_s1, 1024, %s176_s28, [#allocation6], %s942_s8, %s942_s8, %s943_s9  }
  0x1f   : > { %s827_s12 = scalar_lea.vmem %s192_s6, 1024  ;;  %p835_p2 = scmp.lt.s32.totalorder %s192_s6, %s192_s6 }
  0x20   : > { %p828_p1 = scmp.ne.s32.totalorder %s192_s6, %s827_s12  ;;  %p836_p6 = scmp.lt.s32.totalorder %s827_s12, %s827_s12 }
  0x22   : > { %p830_p13 = pnand %p828_p1, %p792_p12  ;;  %p837_p5 = por %p836_p6, %p835_p2 }
  0x24   : > { %p831_p0 = pneg %p830_p13 }
  0x26   : > { %p838_p10 = pnand %p837_p5, %p831_p0 }
  0x28   : > { %841 = shalt.err (!%p838_p10)
}
  0x29   : > { %717 = dma.hbm_to_vmem [thread:$0]  (!%p1027_p11), %s1171_s3, 1024, %s192_s6, [#allocation6], %s942_s8, %s942_s8, %s943_s9  }
  0x2a   : > { %s1050_s15 = sadd.s32 1, %s938_s21   ;;  %s29_s16 = sadd.s32 1, %s934_s20 }
  0x2b   : > { %s26_s17 = ssub.s32 %s938_s21, %s1050_s15  ;;  %p36_p1 = scmp.ne.s32.totalorder %s934_s20, %s930_s19 }
  0x2c   : > { %p27_p2 = scmp.eq.s32.totalorder %s26_s17, 0  ;;  %p37_p6 = scmp.eq.s32.totalorder %s938_s21, 0 }
  0x2d   : > { %p1182_p12 = scmp.eq.s32.totalorder %s999_s22, 1  ;;  %p728_p7 = scmp.lt.s32.totalorder %s938_s21, 2 }
  0x2e   : > { %s1066_s27 = scalar_select %p27_p2, %s934_s20, %s29_s16  }
  0x2f   : > { %p1060_p3 = por %p1182_p12, %p36_p1  ;;  %p38_p9 = por %p37_p6, %p36_p1 }
  0x30   : > { %s208_s28 = sand.u32 1, %s934_s20   ;;  %s612_s30 = sshll.u32 %s938_s21, 7 }
  0x31   : > { %s1183_s23 = scalar_select %p1060_p3, 1, 0 }
  0x32   : > { %s611_s29 = sshll.u32 %s208_s28, 3  ;;  %s1073_s8 = scalar_lea.hbm %s1168_s0, %s612_s30 }
  0x33   : > { %s212_s9 = scalar_lea.vmem [#allocation2], %s611_s29  ;;  %p1075_p11 = pnand %p728_p7, %p38_p9 }
  0x34   : > { %s219_s10 = sshll.u32 %s212_s9, 4  ;;  %s209_s12 = scalar_lea.sflag [#allocation3], %s208_s28  ;;  %s220_s10 = int_to_ptr.vmem [resolvable:$true] %s219_s10 }
  0x35   : > { %s842_s13 = scalar_lea.hbm %s1073_s8, 128  ;;  %p844_p0 = pneg %p1075_p11 }
  0x36   : > { %p843_p13 = scmp.ne.s32.totalorder %s1073_s8, %s842_s13  ;;  %s847_s17 = scalar_lea.hbm %s1168_s0, 256 }
  0x37   : > { %p848_p1 = scmp.lt.s32.totalorder %s1073_s8, %s1168_s0  ;;  %p849_p2 = scmp.lt.s32.totalorder %s847_s17, %s842_s13 }
  0x38   : > { %p845_p5 = pnand %p844_p0, %p843_p13 }
  0x39   : > { %p850_p6 = por %p849_p2, %p848_p1 }
  0x3a   : > { %p846_p10 = pneg %p845_p5 }
  0x3c   : > { %p851_p12 = pnand %p850_p6, %p846_p10 }
  0x3e   : > { %854 = shalt.err (!%p851_p12)
}
  0x3f   : > { %s855_s6 = scalar_lea.vmem %s220_s10, 128  ;;  %s944_s28 = smov [#allocation2]  }
  0x40   : > { %p856_p7 = scmp.ne.s32.totalorder %s220_s10, %s855_s6  ;;  %s860_s7 = sshll.u32 %s944_s28, 4  ;;  %s861_s7 = int_to_ptr.vmem [resolvable:$false] %s860_s7 }
  0x41   : > { %s862_s9 = scalar_lea.vmem %s861_s7, 256  ;;  %p863_p13 = scmp.lt.s32.totalorder %s220_s10, %s861_s7 }
  0x42   : > { %p858_p9 = pnand %p856_p7, %p844_p0  ;;  %p864_p5 = scmp.lt.s32.totalorder %s862_s9, %s855_s6 }
  0x44   : > { %p859_p3 = pneg %p858_p9  ;;  %p865_p4 = por %p864_p5, %p863_p13 }
  0x46   : > { %p866_p8 = pnand %p865_p4, %p859_p3 }
  0x48   : > { %869 = shalt.err (!%p866_p8)
}
  0x49   : > { %721 = dma.hbm_to_vmem [thread:$0]  (!%p1075_p11), %s1073_s8, 128, %s220_s10, %s209_s12  }
  0x4a   : > { %p1185_p10 = scmp.ne.s32.totalorder %s1180_s26, 0 }
  0x4b   : > { %s1096_s13 = sand.u32 (!%p1185_p10), 1, %s930_s19   ;;  %p1186_p4 = scmp.ne.s32.totalorder (!%p1185_p10), %s1178_s24, 0 }
  0x4c   : > { %228 = sbr.rel (%p1185_p10) target bundleno = 559 (0x22f), region = 40  ;;  %s614_s14 = sshll.u32 (!%p1185_p10), %s1096_s13, 3 }
  0x4d   : > { %s231_s16 = scalar_lea.sflag (!%p1185_p10), [#allocation3], %s1096_s13  ;;  %s1102_s17 = scalar_lea.vmem (!%p1185_p10), [#allocation2], %s614_s14 }
  0x51   : > { %913 = dma.done.wait (%p1186_p4), %s231_s16, 128  }
  0x52   : > { %915 = vsyncadd (%p1186_p4), %s231_s16, 4294967168  ;;  %p1187_p8 = scmp.eq.s32.totalorder %s999_s22, 0 }
  0x54   : > { %917 = dma.done.wait (%p1187_p8), [#allocation6], 2048   ;;  %p1188_p3 = pmov %p1187_p8 }
  0x55   : > { %v945_v0 = vmov 0.0   ;;  %vm946_vm0 = vmmov 0   ;;  %v770_v1 = vld [vmem:[#allocation5 + $0x38] sm:$0xff]   ;;  %v771_v2 = vld [vmem:[#allocation5 + $0x30] sm:$0xff]   ;;  %v772_v3 = vld [vmem:[#allocation5 + $0x28] sm:$0xff]   ;;  %s638_s11 = sshll.u32 %s999_s22, 7 }
  0x56   : > { %919 = vsyncadd (%p1188_p3), [#allocation6], 4294965248  ;;  %659 = vmatprep.subr.bf16.mxu0 %v945_v0  ;;  %675 = vmatprep.mubr.msk.bf16.mxu0 %vm946_vm0, %v945_v0  ;;  %v773_v4 = vld [vmem:[#allocation5 + $0x20] sm:$0xff]   ;;  %v774_v5 = vld [vmem:[#allocation5 + $0x18] sm:$0xff]   ;;  %s268_s12 = scalar_lea.vmem [#allocation8], %s614_s14  ;;  %s1125_s28 = scalar_lea.hbm %s1173_s5, %s638_s11 }
  0x57   : > { %679 = vmatprep.subr.bf16.mxu1 %v945_v0  ;;  %695 = vmatprep.mubr.msk.bf16.mxu1 %vm946_vm0, %v945_v0  ;;  %v775_v6 = vld [vmem:[#allocation5 + $0x10] sm:$0xff]   ;;  %v776_v7 = vld [vmem:[#allocation5 + $0x8] sm:$0xff]   ;;  %v777_v8 = vld [vmem:[#allocation5] sm:$0xff]   ;;  %s517_s30 = sshll.u32 %s268_s12, 4  ;;  %s504_s7 = scalar_lea.sflag [#allocation4], %s1096_s13  ;;  %s1127_s30 = int_to_ptr.vmem [resolvable:$true] %s517_s30 }
  0x58   : > { %660 = vmatpush3.bf16.msra.mxu0 %v770_v1  ;;  %v270_v9 = vld [vmem:[%s1102_s17] sm:$0xff]  ;;  %v780_v13 = vld [vmem:[#allocation7 + $0x28] sm:$0xff]   ;;  %v781_v14 = vld [vmem:[#allocation7 + $0x20] sm:$0xff]   ;;  %s870_s22 = scalar_lea.vmem %s1127_s30, 128  ;;  %p1189_p0 = scmp.ne.s32.totalorder %s1183_s23, 0 }
  0x59   : > { %661 = vmatprep.subr.bf16.mxu0 %v945_v0  ;;  %v271_v10 = vpack.c.bf16 %v270_v9, %v270_v9  ;;  %v778_v11 = vld [vmem:[#allocation7 + $0x38] sm:$0xff]   ;;  %v779_v12 = vld [vmem:[#allocation7 + $0x30] sm:$0xff]   ;;  %v784_v17 = vld [vmem:[#allocation7 + $0x8] sm:$0xff]   ;;  %p871_p11 = scmp.ne.s32.totalorder %s1127_s30, %s870_s22  ;;  %s947_s9 = smov [#allocation8]  }
  0x5a   : > { %680 = vmatpush3.bf16.msra.mxu1 %v778_v11  ;;  %v782_v15 = vld [vmem:[#allocation7 + $0x18] sm:$0xff]   ;;  %v783_v16 = vld [vmem:[#allocation7 + $0x10] sm:$0xff]   ;;  %v785_v18 = vld [vmem:[#allocation7] sm:$0xff]   ;;  %s874_s14 = sshll.u32 %s947_s9, 4  ;;  %s875_s14 = int_to_ptr.vmem [resolvable:$false] %s874_s14 }
  0x5b   : > { %681 = vmatprep.subr.bf16.mxu1 %v945_v0  ;;  %v618_v19 = vld [vmem:[%s1170_s2] ss:$0 sm:$0xff]  ;;  %p872_p1 = pnand %p871_p11, %p1189_p0  ;;  %s876_s16 = scalar_lea.vmem %s875_s14, 256 }
  0x5c   : > { %662 = vmatpush3.bf16.msra.mxu0 %v771_v2  ;;  %v628_v31 = vld [vmem:[%s1172_s4] ss:$0 sm:$0xff]  ;;  %p877_p6 = scmp.lt.s32.totalorder %s1127_s30, %s875_s14  ;;  %p878_p12 = scmp.lt.s32.totalorder %s876_s16, %s870_s22 }
  0x5d   : > { %663 = vmatprep.subr.bf16.mxu0 %v945_v0  ;;  %p873_p2 = pneg %p872_p1 }
  0x5e   : > { %682 = vmatpush3.bf16.msra.mxu1 %v779_v12  ;;  %p879_p7 = por %p878_p12, %p877_p6 }
  0x5f   : > { %683 = vmatprep.subr.bf16.mxu1 %v945_v0 }
  0x60   : > { %664 = vmatpush3.bf16.msra.mxu0 %v772_v3  ;;  %p880_p9 = pnand %p879_p7, %p873_p2 }
  0x61   : > { %665 = vmatprep.subr.bf16.mxu0 %v945_v0 }
  0x62   : > { %684 = vmatpush3.bf16.msra.mxu1 %v780_v13 }
  0x63   : > { %685 = vmatprep.subr.bf16.mxu1 %v945_v0 }
  0x64   : > { %666 = vmatpush3.bf16.msra.mxu0 %v773_v4 }
  0x65   : > { %667 = vmatprep.subr.bf16.mxu0 %v945_v0 }
  0x66   : > { %686 = vmatpush3.bf16.msra.mxu1 %v781_v14 }
  0x67   : > { %687 = vmatprep.subr.bf16.mxu1 %v945_v0 }
  0x68   : > { %668 = vmatpush3.bf16.msra.mxu0 %v774_v5 }
  0x69   : > { %669 = vmatprep.subr.bf16.mxu0 %v945_v0 }
  0x6a   : > { %688 = vmatpush3.bf16.msra.mxu1 %v782_v15 }
  0x6b   : > { %689 = vmatprep.subr.bf16.mxu1 %v945_v0 }
  0x6c   : > { %670 = vmatpush3.bf16.msra.mxu0 %v775_v6 }
  0x6d   : > { %671 = vmatprep.subr.bf16.mxu0 %v945_v0 }
  0x6e   : > { %690 = vmatpush3.bf16.msra.mxu1 %v783_v16 }
  0x6f   : > { %691 = vmatprep.subr.bf16.mxu1 %v945_v0 }
  0x70   : > { %672 = vmatpush3.bf16.msra.mxu0 %v776_v7 }
  0x71   : > { %673 = vmatprep.subr.bf16.mxu0 %v945_v0 }
  0x72   : > { %692 = vmatpush3.bf16.msra.mxu1 %v784_v17 }
  0x73   : > { %693 = vmatprep.subr.bf16.mxu1 %v945_v0 }
  0x74   : > { %674 = vmatpush3.bf16.msra.mxu0 %v777_v8 }
  0x76   : > { %694 = vmatpush3.bf16.msra.mxu1 %v785_v18 }
  0x77   : > { %676 = vmatmul.mubr.bf16.vlgmr.msra.gmra.mxu0 %v271_v10 }
 0x137   : > { %v377_v20 = vpop.f32.mrf.mxu0 }
 0x138   : > { %v378_v21 = vadd.f32 %v618_v19, %v377_v20 }
 0x139   : > { %v677_v22 = vpop.f32.mrf.mxu0 }
 0x13a   : > { %v627_v23 = vmul.f32 -1.442695, %v378_v21 }
 0x13b   : > { %v380_v24 = vpop.f32.mrf.mxu0 }
 0x13c   : > { %786 = vpow2.f32 %v627_v23 }
 0x13d   : > { %v678_v25 = vpop.f32.mrf.mxu0 }
 0x149   : > { %v787_v26 = vpop.eup %786 }
 0x14a   : > { %v386_v27 = vadd.f32 1.0, %v787_v26 }
 0x14c   : > { %788 = vrcp.f32 %v386_v27 }
 0x159   : > { %v789_v28 = vpop.eup %788 }
 0x15a   : > { %v389_v29 = vmul.f32 %v789_v28, %v378_v21 }
 0x15c   : > { %v390_v30 = vpack.c.bf16 %v389_v29, %v389_v29 }
 0x15e   : > { %696 = vmatmul.mubr.bf16.vlgmr.msra.gmra.mxu1 %v390_v30 }
 0x21e   : > { %v496_v32 = vpop.f32.mrf.mxu1 }
 0x21f   : > { %v497_v33 = vadd.f32 %v628_v31, %v496_v32 }
 0x220   : > { %v697_v34 = vpop.f32.mrf.mxu1 }
 0x221   : > { %502 = vst [vmem:[%s268_s12] sm:$0xff] %v497_v33 }
 0x222   : > { %v499_v35 = vpop.f32.mrf.mxu1 }
 0x223   : > { %883 = shalt.err (!%p880_p9)
}
 0x224   : > { %s884_s17 = scalar_lea.hbm %s1125_s28, 128  ;;  %s888_s26 = scalar_lea.hbm %s1173_s5, 256 }
 0x225   : > { %p885_p13 = scmp.ne.s32.totalorder %s1125_s28, %s884_s17  ;;  %p889_p4 = scmp.lt.s32.totalorder %s1125_s28, %s1173_s5 }
 0x226   : > { %p890_p8 = scmp.lt.s32.totalorder %s888_s26, %s884_s17 }
 0x227   : > { %p886_p5 = pnand %p885_p13, %p1189_p0 }
 0x228   : > { %p891_p3 = por %p890_p8, %p889_p4 }
 0x229   : > { %p887_p10 = pneg %p886_p5 }
 0x22b   : > { %p892_p11 = pnand %p891_p3, %p887_p10 }
 0x22d   : > { %895 = shalt.err (!%p892_p11)
}
 0x22e   : > { %709 = dma.vmem_to_hbm [thread:$0]  (%p1189_p0), %s1127_s30, 128, %s1125_s28, %s504_s7   ;;  %v698_v36 = vpop.f32.mrf.mxu1 }
 0x22f PF: > { %s529_s11 = sand.u32 1, %s926_s18   ;;  %p1190_p1 = scmp.ne.s32.totalorder %s1179_s25, 0 }
 0x230   : > { %p1191_p2 = scmp.ge.s32.totalorder %s938_s21, 2  ;;  %s530_s12 = scalar_lea.sflag [#allocation4], %s529_s11 }
 0x232   : > { %p723_p6 = pnand %p1191_p2, %p1190_p1 }
 0x234   : > { %p724_p12 = pneg %p723_p6 }
 0x236   : > { %921 = dma.done.wait (%p724_p12), %s530_s12, 128  }
 0x237   : > { %923 = vsyncadd (%p724_p12), %s530_s12, 4294967168  ;;  %p19_p7 = scmp.ge.s32.totalorder %s1050_s15, 4   ;;  %s1192_s18 = smov %s930_s19 }
 0x238   : > { %s1193_s19 = smov %s934_s20  ;;  %s1194_s20 = smov %s1066_s27 }
 0x239   : > { %s1195_s21 = smov %s1050_s15  ;;  %21 = sbr.rel (!%p19_p7) target bundleno = 6 (0x6), region = 93 }
 0x23e   :  { %535 = vsyncpa [#allocation3], 1 }
 0x23f   :  { %537 = vsyncpa [#allocation3 + $0x1], 1 }
 0x240   :  { %538 = vsyncpa [#allocation6], 1 }
 0x241   :  { %539 = vsyncpa [#allocation4], 1 }
 0x242   :  { %541 = vsyncpa [#allocation4 + $0x1], 1 }

</bundles_post_ra>
